<compile_context>
chip_gen: v6e
topology: v6e:2x2x1
jax: 0.10.0
libtpu: 0.0.40
codegen_flags: <defaults>
</compile_context>

<pallas_src>
import functools

import jax
import jax.numpy as jnp
from jax import lax
from jax.experimental import pallas as pl
from jax.experimental.pallas import tpu as pltpu


def lstm_tagger_kernel(ids_ref, embed_ref, wih_ref, whh_ref, b_ref,
                       wtag_ref, btag_ref, out_ref, *, seq_len, hidden):
    emb_dim = embed_ref.shape[1]

    # --- 1) In-kernel embedding gather: ids are SMEM scalars, table is VMEM.
    #     Rows are pulled with dynamic-offset loads and assembled into a value
    #     with cheap VPU row-selects (no scratch, no concat).
    emb = jnp.zeros((seq_len, emb_dim), jnp.float32)
    emb_row_ids = lax.broadcasted_iota(jnp.int32, (seq_len, emb_dim), 0)
    for t in range(seq_len):
        row = embed_ref[pl.ds(ids_ref[t], 1), :]          # (1, E) dynamic-row load
        emb = jnp.where(emb_row_ids == t, row, emb)

    # --- 2) Hoisted input projection: one (S, E) @ (E, 4H) MXU call, value-resident.
    #     (S=8, 4H=128) f32 == exactly one vreg.
    xw = jnp.dot(emb, wih_ref[...], preferred_element_type=jnp.float32) + b_ref[...]

    # --- 3) Recurrence, fully unrolled (seq_len is static/small).
    #     W_hh read once; h/c/hs all stay register-resident.
    whh = whh_ref[...]                                     # (H, 4H)
    h = jnp.zeros((1, hidden), jnp.float32)
    c = jnp.zeros((1, hidden), jnp.float32)
    hs = jnp.zeros((seq_len, hidden), jnp.float32)
    hs_row_ids = lax.broadcasted_iota(jnp.int32, (seq_len, hidden), 0)

    for t in range(seq_len):
        # PyTorch gate order: i, f, g, o along the 4H axis.  The g columns of
        # W_ih/W_hh/bias were pre-scaled by 2 in the wrapper, so a single
        # sigmoid pass covers all four gates (tanh(x) = 2*sigmoid(2x) - 1).
        gates = xw[t:t + 1, :] + jnp.dot(h, whh, preferred_element_type=jnp.float32)
        sig = jax.nn.sigmoid(gates)                        # one EUP pass over (1, 4H)
        i_g = sig[:, 0 * hidden:1 * hidden]
        f_g = sig[:, 1 * hidden:2 * hidden]
        g_g = 2.0 * sig[:, 2 * hidden:3 * hidden] - 1.0    # == tanh(pre-scaled gate)
        o_g = sig[:, 3 * hidden:4 * hidden]
        c = f_g * c + i_g * g_g
        h = o_g * jnp.tanh(c)                              # second (unavoidable) EUP pass
        hs = jnp.where(hs_row_ids == t, h, hs)             # value-resident history

    # --- 4) Output head: one (S, H) @ (H, T) matmul + vectorized log_softmax.
    tag = jnp.dot(hs, wtag_ref[...], preferred_element_type=jnp.float32) + btag_ref[...]
    m = jnp.max(tag, axis=-1, keepdims=True)
    s = tag - m
    lse = jnp.log(jnp.sum(jnp.exp(s), axis=-1, keepdims=True))
    out_ref[...] = (s - lse).astype(out_ref.dtype)


def prepare_params(params):
    """One-time parameter prep (transposes, bias fold, g-gate pre-scale).

    Hoisted out of the forward path so per-call work is only the pallas_call.
    """
    hidden = params["w_hh"].shape[1]
    tagset = params["w_tag"].shape[0]

    wih_t = params["w_ih"].T.astype(jnp.float32)                       # (E, 4H)
    whh_t = params["w_hh"].T.astype(jnp.float32)                       # (H, 4H)
    b = (params["b_ih"] + params["b_hh"]).reshape(1, 4 * hidden).astype(jnp.float32)

    # Pre-scale the g-gate (3rd quarter) columns by 2 so the kernel can compute
    # tanh via a single sigmoid pass: tanh(x) = 2*sigmoid(2x) - 1 (exact).
    g_scale = jnp.ones((4 * hidden,), jnp.float32).at[2 * hidden:3 * hidden].set(2.0)
    wih_t = wih_t * g_scale
    whh_t = whh_t * g_scale
    b = b * g_scale

    return {
        "embed_w": params["embed_w"].astype(jnp.float32),              # (V, E)
        "wih_t": wih_t,
        "whh_t": whh_t,
        "b": b,
        "wtag_t": params["w_tag"].T.astype(jnp.float32),               # (H, T)
        "btag": params["b_tag"].reshape(1, tagset).astype(jnp.float32),
        "hidden": hidden,
        "tagset": tagset,
    }


def lstm_tagger_forward(input_words, prepped):
    """input_words: (seq_len,) int32 token ids; prepped: output of prepare_params.

    Returns the full (seq_len, tagset) log-prob matrix (the module's forward()
    returns its last row, tag_scores[-1]).
    """
    seq_len = input_words.shape[0]
    hidden = prepped["hidden"]
    tagset = prepped["tagset"]

    vmem = pl.BlockSpec(memory_space=pltpu.MemorySpace.VMEM)
    smem = pl.BlockSpec(memory_space=pltpu.MemorySpace.SMEM)
    kernel = functools.partial(lstm_tagger_kernel, seq_len=seq_len, hidden=hidden)

    return pl.pallas_call(
        kernel,
        out_shape=jax.ShapeDtypeStruct((seq_len, tagset), jnp.float32),
        in_specs=[smem, vmem, vmem, vmem, vmem, vmem, vmem],
        out_specs=vmem,
    )(
        input_words.astype(jnp.int32),   # ids -> SMEM (in-kernel gather)
        prepped["embed_w"],
        prepped["wih_t"],
        prepped["whh_t"],
        prepped["b"],
        prepped["wtag_t"],
        prepped["btag"],
    )


def lstm_tagger_reference(input_words, params):
    """Pure-JAX reference matching PyTorch semantics (unscaled weights, true tanh)."""
    embeds = params["embed_w"][input_words]
    hidden = params["w_hh"].shape[1]

    def step(carry, x):
        h, c = carry
        gates = x @ params["w_ih"].T + params["b_ih"] + h @ params["w_hh"].T + params["b_hh"]
        i = jax.nn.sigmoid(gates[0 * hidden:1 * hidden])
        f = jax.nn.sigmoid(gates[1 * hidden:2 * hidden])
        g = jnp.tanh(gates[2 * hidden:3 * hidden])
        o = jax.nn.sigmoid(gates[3 * hidden:4 * hidden])
        c = f * c + i * g
        h = o * jnp.tanh(c)
        return (h, c), h

    h0 = jnp.zeros((hidden,), jnp.float32)
    _, hs = lax.scan(step, (h0, h0), embeds)
    tag_space = hs @ params["w_tag"].T + params["b_tag"]
    return jax.nn.log_softmax(tag_space, axis=1)


if __name__ == "__main__":
    # Small, forward-consistent sizes.
    vocab_size = 50
    embedding_dim = 32
    hidden_dim = 32
    tagset_size = 8
    seq_len = 8

    key = jax.random.PRNGKey(0)
    ks = jax.random.split(key, 8)
    bound = 1.0 / jnp.sqrt(hidden_dim)
    params = {
        "embed_w": jax.random.normal(ks[0], (vocab_size, embedding_dim), jnp.float32) * 0.1,
        "w_ih": jax.random.uniform(ks[1], (4 * hidden_dim, embedding_dim), jnp.float32, -bound, bound),
        "w_hh": jax.random.uniform(ks[2], (4 * hidden_dim, hidden_dim), jnp.float32, -bound, bound),
        "b_ih": jax.random.uniform(ks[3], (4 * hidden_dim,), jnp.float32, -bound, bound),
        "b_hh": jax.random.uniform(ks[4], (4 * hidden_dim,), jnp.float32, -bound, bound),
        "w_tag": jax.random.uniform(ks[5], (tagset_size, hidden_dim), jnp.float32, -bound, bound),
        "b_tag": jax.random.uniform(ks[6], (tagset_size,), jnp.float32, -bound, bound),
    }
    input_words = jax.random.randint(ks[7], (seq_len,), 0, vocab_size, dtype=jnp.int32)

    prepped = prepare_params(params)                       # one-time setup, off the call path
    tag_scores = jax.block_until_ready(lstm_tagger_forward(input_words, prepped))
    ref = jax.block_until_ready(lstm_tagger_reference(input_words, params))

    assert tag_scores.shape == (seq_len, tagset_size)
    # Slightly relaxed atol: the tanh->sigmoid fold is exact in real arithmetic but
    # rounds a few ulps differently in f32.
    assert jnp.allclose(tag_scores, ref, atol=3e-5, rtol=1e-5)
    # Module forward() returns tag_scores[-1]; check that row too.
    assert jnp.allclose(tag_scores[-1], ref[-1], atol=3e-5, rtol=1e-5)
    print("KERNEL_OK")
</pallas_src>

<mosaic_0001>
module attributes {stable_mosaic.version = 11 : i64} {
  func.func @lstm_tagger_kernel(%arg0: memref<8xi32, #tpu.memory_space<smem>>, %arg1: memref<50x32xf32, #tpu.memory_space<vmem>>, %arg2: memref<32x128xf32, #tpu.memory_space<vmem>>, %arg3: memref<32x128xf32, #tpu.memory_space<vmem>>, %arg4: memref<1x128xf32, #tpu.memory_space<vmem>>, %arg5: memref<32x8xf32, #tpu.memory_space<vmem>>, %arg6: memref<1x8xf32, #tpu.memory_space<vmem>>, %arg7: memref<8x8xf32, #tpu.memory_space<vmem>>) attributes {dimension_semantics = [], scalar_prefetch = 0 : i64, scratch_operands = 0 : i64, tpu.core_type = #tpu.core_type<tc>} {
    %cst = arith.constant 0.000000e+00 : f32
    %0 = vector.broadcast %cst : f32 to vector<8x32xf32>
    %1 = tpu.iota {dimensions = array<i32: 0>} : vector<8x32xi32>
    %c0 = arith.constant 0 : index
    %2 = memref.load %arg0[%c0] : memref<8xi32, #tpu.memory_space<smem>>
    %3 = arith.index_cast %2 : i32 to index
    %c0_0 = arith.constant 0 : index
    %4 = vector.load %arg1[%3, %c0_0] : memref<50x32xf32, #tpu.memory_space<vmem>>, vector<1x32xf32>
    %c0_i32 = arith.constant 0 : i32
    %5 = vector.broadcast %c0_i32 : i32 to vector<8x32xi32>
    %6 = arith.cmpi eq, %1, %5 : vector<8x32xi32>
    %7 = vector.shape_cast %4 : vector<1x32xf32> to vector<1x32xf32>
    %8 = vector.broadcast %7 : vector<1x32xf32> to vector<8x32xf32>
    %9 = arith.select %6, %8, %0 : vector<8x32xi1>, vector<8x32xf32>
    %c1 = arith.constant 1 : index
    %10 = memref.load %arg0[%c1] : memref<8xi32, #tpu.memory_space<smem>>
    %11 = arith.index_cast %10 : i32 to index
    %c0_1 = arith.constant 0 : index
    %12 = vector.load %arg1[%11, %c0_1] : memref<50x32xf32, #tpu.memory_space<vmem>>, vector<1x32xf32>
    %c1_i32 = arith.constant 1 : i32
    %13 = vector.broadcast %c1_i32 : i32 to vector<8x32xi32>
    %14 = arith.cmpi eq, %1, %13 : vector<8x32xi32>
    %15 = vector.shape_cast %12 : vector<1x32xf32> to vector<1x32xf32>
    %16 = vector.broadcast %15 : vector<1x32xf32> to vector<8x32xf32>
    %17 = arith.select %14, %16, %9 : vector<8x32xi1>, vector<8x32xf32>
    %c2 = arith.constant 2 : index
    %18 = memref.load %arg0[%c2] : memref<8xi32, #tpu.memory_space<smem>>
    %19 = arith.index_cast %18 : i32 to index
    %c0_2 = arith.constant 0 : index
    %20 = vector.load %arg1[%19, %c0_2] : memref<50x32xf32, #tpu.memory_space<vmem>>, vector<1x32xf32>
    %c2_i32 = arith.constant 2 : i32
    %21 = vector.broadcast %c2_i32 : i32 to vector<8x32xi32>
    %22 = arith.cmpi eq, %1, %21 : vector<8x32xi32>
    %23 = vector.shape_cast %20 : vector<1x32xf32> to vector<1x32xf32>
    %24 = vector.broadcast %23 : vector<1x32xf32> to vector<8x32xf32>
    %25 = arith.select %22, %24, %17 : vector<8x32xi1>, vector<8x32xf32>
    %c3 = arith.constant 3 : index
    %26 = memref.load %arg0[%c3] : memref<8xi32, #tpu.memory_space<smem>>
    %27 = arith.index_cast %26 : i32 to index
    %c0_3 = arith.constant 0 : index
    %28 = vector.load %arg1[%27, %c0_3] : memref<50x32xf32, #tpu.memory_space<vmem>>, vector<1x32xf32>
    %c3_i32 = arith.constant 3 : i32
    %29 = vector.broadcast %c3_i32 : i32 to vector<8x32xi32>
    %30 = arith.cmpi eq, %1, %29 : vector<8x32xi32>
    %31 = vector.shape_cast %28 : vector<1x32xf32> to vector<1x32xf32>
    %32 = vector.broadcast %31 : vector<1x32xf32> to vector<8x32xf32>
    %33 = arith.select %30, %32, %25 : vector<8x32xi1>, vector<8x32xf32>
    %c4 = arith.constant 4 : index
    %34 = memref.load %arg0[%c4] : memref<8xi32, #tpu.memory_space<smem>>
    %35 = arith.index_cast %34 : i32 to index
    %c0_4 = arith.constant 0 : index
    %36 = vector.load %arg1[%35, %c0_4] : memref<50x32xf32, #tpu.memory_space<vmem>>, vector<1x32xf32>
    %c4_i32 = arith.constant 4 : i32
    %37 = vector.broadcast %c4_i32 : i32 to vector<8x32xi32>
    %38 = arith.cmpi eq, %1, %37 : vector<8x32xi32>
    %39 = vector.shape_cast %36 : vector<1x32xf32> to vector<1x32xf32>
    %40 = vector.broadcast %39 : vector<1x32xf32> to vector<8x32xf32>
    %41 = arith.select %38, %40, %33 : vector<8x32xi1>, vector<8x32xf32>
    %c5 = arith.constant 5 : index
    %42 = memref.load %arg0[%c5] : memref<8xi32, #tpu.memory_space<smem>>
    %43 = arith.index_cast %42 : i32 to index
    %c0_5 = arith.constant 0 : index
    %44 = vector.load %arg1[%43, %c0_5] : memref<50x32xf32, #tpu.memory_space<vmem>>, vector<1x32xf32>
    %c5_i32 = arith.constant 5 : i32
    %45 = vector.broadcast %c5_i32 : i32 to vector<8x32xi32>
    %46 = arith.cmpi eq, %1, %45 : vector<8x32xi32>
    %47 = vector.shape_cast %44 : vector<1x32xf32> to vector<1x32xf32>
    %48 = vector.broadcast %47 : vector<1x32xf32> to vector<8x32xf32>
    %49 = arith.select %46, %48, %41 : vector<8x32xi1>, vector<8x32xf32>
    %c6 = arith.constant 6 : index
    %50 = memref.load %arg0[%c6] : memref<8xi32, #tpu.memory_space<smem>>
    %51 = arith.index_cast %50 : i32 to index
    %c0_6 = arith.constant 0 : index
    %52 = vector.load %arg1[%51, %c0_6] : memref<50x32xf32, #tpu.memory_space<vmem>>, vector<1x32xf32>
    %c6_i32 = arith.constant 6 : i32
    %53 = vector.broadcast %c6_i32 : i32 to vector<8x32xi32>
    %54 = arith.cmpi eq, %1, %53 : vector<8x32xi32>
    %55 = vector.shape_cast %52 : vector<1x32xf32> to vector<1x32xf32>
    %56 = vector.broadcast %55 : vector<1x32xf32> to vector<8x32xf32>
    %57 = arith.select %54, %56, %49 : vector<8x32xi1>, vector<8x32xf32>
    %c7 = arith.constant 7 : index
    %58 = memref.load %arg0[%c7] : memref<8xi32, #tpu.memory_space<smem>>
    %59 = arith.index_cast %58 : i32 to index
    %c0_7 = arith.constant 0 : index
    %60 = vector.load %arg1[%59, %c0_7] : memref<50x32xf32, #tpu.memory_space<vmem>>, vector<1x32xf32>
    %c7_i32 = arith.constant 7 : i32
    %61 = vector.broadcast %c7_i32 : i32 to vector<8x32xi32>
    %62 = arith.cmpi eq, %1, %61 : vector<8x32xi32>
    %63 = vector.shape_cast %60 : vector<1x32xf32> to vector<1x32xf32>
    %64 = vector.broadcast %63 : vector<1x32xf32> to vector<8x32xf32>
    %65 = arith.select %62, %64, %57 : vector<8x32xi1>, vector<8x32xf32>
    %c0_8 = arith.constant 0 : index
    %c0_9 = arith.constant 0 : index
    %66 = vector.load %arg2[%c0_8, %c0_9] : memref<32x128xf32, #tpu.memory_space<vmem>>, vector<32x128xf32>
    %cst_10 = arith.constant dense<0.000000e+00> : vector<8x128xf32>
    %67 = tpu.matmul %65, %66, %cst_10 {dimension_numbers = #tpu.dot_dimension_numbers<[1], [0], [0], [1], [0, 0, 1, 1], [], []>} : vector<8x32xf32>, vector<32x128xf32>, vector<8x128xf32> -> vector<8x128xf32>
    %c0_11 = arith.constant 0 : index
    %c0_12 = arith.constant 0 : index
    %68 = vector.load %arg4[%c0_11, %c0_12] : memref<1x128xf32, #tpu.memory_space<vmem>>, vector<1x128xf32>
    %69 = vector.broadcast %68 : vector<1x128xf32> to vector<8x128xf32>
    %70 = arith.addf %67, %69 : vector<8x128xf32>
    %c0_13 = arith.constant 0 : index
    %c0_14 = arith.constant 0 : index
    %71 = vector.load %arg3[%c0_13, %c0_14] : memref<32x128xf32, #tpu.memory_space<vmem>>, vector<32x128xf32>
    %cst_15 = arith.constant 0.000000e+00 : f32
    %72 = vector.broadcast %cst_15 : f32 to vector<1x32xf32>
    %cst_16 = arith.constant 0.000000e+00 : f32
    %73 = vector.broadcast %cst_16 : f32 to vector<1x32xf32>
    %cst_17 = arith.constant 0.000000e+00 : f32
    %74 = vector.broadcast %cst_17 : f32 to vector<8x32xf32>
    %75 = tpu.iota {dimensions = array<i32: 0>} : vector<8x32xi32>
    %76 = vector.extract_strided_slice %70 {offsets = [0, 0], sizes = [1, 128], strides = [1, 1]} : vector<8x128xf32> to vector<1x128xf32>
    %cst_18 = arith.constant dense<0.000000e+00> : vector<1x128xf32>
    %77 = tpu.matmul %72, %71, %cst_18 {dimension_numbers = #tpu.dot_dimension_numbers<[1], [0], [0], [1], [0, 0, 1, 1], [], []>} : vector<1x32xf32>, vector<32x128xf32>, vector<1x128xf32> -> vector<1x128xf32>
    %78 = arith.addf %76, %77 : vector<1x128xf32>
    %79 = arith.negf %78 : vector<1x128xf32>
    %80 = math.exp %79 : vector<1x128xf32>
    %cst_19 = arith.constant 1.000000e+00 : f32
    %81 = vector.broadcast %cst_19 : f32 to vector<1x128xf32>
    %82 = arith.addf %81, %80 : vector<1x128xf32>
    %83 = arith.divf %81, %82 : vector<1x128xf32>
    %84 = vector.extract_strided_slice %83 {offsets = [0, 0], sizes = [1, 32], strides = [1, 1]} : vector<1x128xf32> to vector<1x32xf32>
    %85 = vector.extract_strided_slice %83 {offsets = [0, 32], sizes = [1, 32], strides = [1, 1]} : vector<1x128xf32> to vector<1x32xf32>
    %86 = vector.extract_strided_slice %83 {offsets = [0, 64], sizes = [1, 32], strides = [1, 1]} : vector<1x128xf32> to vector<1x32xf32>
    %cst_20 = arith.constant 2.000000e+00 : f32
    %87 = vector.broadcast %cst_20 : f32 to vector<1x32xf32>
    %88 = arith.mulf %87, %86 : vector<1x32xf32>
    %cst_21 = arith.constant 1.000000e+00 : f32
    %89 = vector.broadcast %cst_21 : f32 to vector<1x32xf32>
    %90 = arith.subf %88, %89 : vector<1x32xf32>
    %91 = vector.extract_strided_slice %83 {offsets = [0, 96], sizes = [1, 32], strides = [1, 1]} : vector<1x128xf32> to vector<1x32xf32>
    %92 = arith.mulf %85, %73 : vector<1x32xf32>
    %93 = arith.mulf %84, %90 : vector<1x32xf32>
    %94 = arith.addf %92, %93 : vector<1x32xf32>
    %95 = math.tanh %94 : vector<1x32xf32>
    %96 = arith.mulf %91, %95 : vector<1x32xf32>
    %c0_i32_22 = arith.constant 0 : i32
    %97 = vector.broadcast %c0_i32_22 : i32 to vector<8x32xi32>
    %98 = arith.cmpi eq, %75, %97 : vector<8x32xi32>
    %99 = vector.shape_cast %96 : vector<1x32xf32> to vector<1x32xf32>
    %100 = vector.broadcast %99 : vector<1x32xf32> to vector<8x32xf32>
    %101 = arith.select %98, %100, %74 : vector<8x32xi1>, vector<8x32xf32>
    %102 = vector.extract_strided_slice %70 {offsets = [1, 0], sizes = [1, 128], strides = [1, 1]} : vector<8x128xf32> to vector<1x128xf32>
    %cst_23 = arith.constant dense<0.000000e+00> : vector<1x128xf32>
    %103 = tpu.matmul %96, %71, %cst_23 {dimension_numbers = #tpu.dot_dimension_numbers<[1], [0], [0], [1], [0, 0, 1, 1], [], []>} : vector<1x32xf32>, vector<32x128xf32>, vector<1x128xf32> -> vector<1x128xf32>
    %104 = arith.addf %102, %103 : vector<1x128xf32>
    %105 = arith.negf %104 : vector<1x128xf32>
    %106 = math.exp %105 : vector<1x128xf32>
    %cst_24 = arith.constant 1.000000e+00 : f32
    %107 = vector.broadcast %cst_24 : f32 to vector<1x128xf32>
    %108 = arith.addf %107, %106 : vector<1x128xf32>
    %109 = arith.divf %107, %108 : vector<1x128xf32>
    %110 = vector.extract_strided_slice %109 {offsets = [0, 0], sizes = [1, 32], strides = [1, 1]} : vector<1x128xf32> to vector<1x32xf32>
    %111 = vector.extract_strided_slice %109 {offsets = [0, 32], sizes = [1, 32], strides = [1, 1]} : vector<1x128xf32> to vector<1x32xf32>
    %112 = vector.extract_strided_slice %109 {offsets = [0, 64], sizes = [1, 32], strides = [1, 1]} : vector<1x128xf32> to vector<1x32xf32>
    %cst_25 = arith.constant 2.000000e+00 : f32
    %113 = vector.broadcast %cst_25 : f32 to vector<1x32xf32>
    %114 = arith.mulf %113, %112 : vector<1x32xf32>
    %cst_26 = arith.constant 1.000000e+00 : f32
    %115 = vector.broadcast %cst_26 : f32 to vector<1x32xf32>
    %116 = arith.subf %114, %115 : vector<1x32xf32>
    %117 = vector.extract_strided_slice %109 {offsets = [0, 96], sizes = [1, 32], strides = [1, 1]} : vector<1x128xf32> to vector<1x32xf32>
    %118 = arith.mulf %111, %94 : vector<1x32xf32>
    %119 = arith.mulf %110, %116 : vector<1x32xf32>
    %120 = arith.addf %118, %119 : vector<1x32xf32>
    %121 = math.tanh %120 : vector<1x32xf32>
    %122 = arith.mulf %117, %121 : vector<1x32xf32>
    %c1_i32_27 = arith.constant 1 : i32
    %123 = vector.broadcast %c1_i32_27 : i32 to vector<8x32xi32>
    %124 = arith.cmpi eq, %75, %123 : vector<8x32xi32>
    %125 = vector.shape_cast %122 : vector<1x32xf32> to vector<1x32xf32>
    %126 = vector.broadcast %125 : vector<1x32xf32> to vector<8x32xf32>
    %127 = arith.select %124, %126, %101 : vector<8x32xi1>, vector<8x32xf32>
    %128 = vector.extract_strided_slice %70 {offsets = [2, 0], sizes = [1, 128], strides = [1, 1]} : vector<8x128xf32> to vector<1x128xf32>
    %cst_28 = arith.constant dense<0.000000e+00> : vector<1x128xf32>
    %129 = tpu.matmul %122, %71, %cst_28 {dimension_numbers = #tpu.dot_dimension_numbers<[1], [0], [0], [1], [0, 0, 1, 1], [], []>} : vector<1x32xf32>, vector<32x128xf32>, vector<1x128xf32> -> vector<1x128xf32>
    %130 = arith.addf %128, %129 : vector<1x128xf32>
    %131 = arith.negf %130 : vector<1x128xf32>
    %132 = math.exp %131 : vector<1x128xf32>
    %cst_29 = arith.constant 1.000000e+00 : f32
    %133 = vector.broadcast %cst_29 : f32 to vector<1x128xf32>
    %134 = arith.addf %133, %132 : vector<1x128xf32>
    %135 = arith.divf %133, %134 : vector<1x128xf32>
    %136 = vector.extract_strided_slice %135 {offsets = [0, 0], sizes = [1, 32], strides = [1, 1]} : vector<1x128xf32> to vector<1x32xf32>
    %137 = vector.extract_strided_slice %135 {offsets = [0, 32], sizes = [1, 32], strides = [1, 1]} : vector<1x128xf32> to vector<1x32xf32>
    %138 = vector.extract_strided_slice %135 {offsets = [0, 64], sizes = [1, 32], strides = [1, 1]} : vector<1x128xf32> to vector<1x32xf32>
    %cst_30 = arith.constant 2.000000e+00 : f32
    %139 = vector.broadcast %cst_30 : f32 to vector<1x32xf32>
    %140 = arith.mulf %139, %138 : vector<1x32xf32>
    %cst_31 = arith.constant 1.000000e+00 : f32
    %141 = vector.broadcast %cst_31 : f32 to vector<1x32xf32>
    %142 = arith.subf %140, %141 : vector<1x32xf32>
    %143 = vector.extract_strided_slice %135 {offsets = [0, 96], sizes = [1, 32], strides = [1, 1]} : vector<1x128xf32> to vector<1x32xf32>
    %144 = arith.mulf %137, %120 : vector<1x32xf32>
    %145 = arith.mulf %136, %142 : vector<1x32xf32>
    %146 = arith.addf %144, %145 : vector<1x32xf32>
    %147 = math.tanh %146 : vector<1x32xf32>
    %148 = arith.mulf %143, %147 : vector<1x32xf32>
    %c2_i32_32 = arith.constant 2 : i32
    %149 = vector.broadcast %c2_i32_32 : i32 to vector<8x32xi32>
    %150 = arith.cmpi eq, %75, %149 : vector<8x32xi32>
    %151 = vector.shape_cast %148 : vector<1x32xf32> to vector<1x32xf32>
    %152 = vector.broadcast %151 : vector<1x32xf32> to vector<8x32xf32>
    %153 = arith.select %150, %152, %127 : vector<8x32xi1>, vector<8x32xf32>
    %154 = vector.extract_strided_slice %70 {offsets = [3, 0], sizes = [1, 128], strides = [1, 1]} : vector<8x128xf32> to vector<1x128xf32>
    %cst_33 = arith.constant dense<0.000000e+00> : vector<1x128xf32>
    %155 = tpu.matmul %148, %71, %cst_33 {dimension_numbers = #tpu.dot_dimension_numbers<[1], [0], [0], [1], [0, 0, 1, 1], [], []>} : vector<1x32xf32>, vector<32x128xf32>, vector<1x128xf32> -> vector<1x128xf32>
    %156 = arith.addf %154, %155 : vector<1x128xf32>
    %157 = arith.negf %156 : vector<1x128xf32>
    %158 = math.exp %157 : vector<1x128xf32>
    %cst_34 = arith.constant 1.000000e+00 : f32
    %159 = vector.broadcast %cst_34 : f32 to vector<1x128xf32>
    %160 = arith.addf %159, %158 : vector<1x128xf32>
    %161 = arith.divf %159, %160 : vector<1x128xf32>
    %162 = vector.extract_strided_slice %161 {offsets = [0, 0], sizes = [1, 32], strides = [1, 1]} : vector<1x128xf32> to vector<1x32xf32>
    %163 = vector.extract_strided_slice %161 {offsets = [0, 32], sizes = [1, 32], strides = [1, 1]} : vector<1x128xf32> to vector<1x32xf32>
    %164 = vector.extract_strided_slice %161 {offsets = [0, 64], sizes = [1, 32], strides = [1, 1]} : vector<1x128xf32> to vector<1x32xf32>
    %cst_35 = arith.constant 2.000000e+00 : f32
    %165 = vector.broadcast %cst_35 : f32 to vector<1x32xf32>
    %166 = arith.mulf %165, %164 : vector<1x32xf32>
    %cst_36 = arith.constant 1.000000e+00 : f32
    %167 = vector.broadcast %cst_36 : f32 to vector<1x32xf32>
    %168 = arith.subf %166, %167 : vector<1x32xf32>
    %169 = vector.extract_strided_slice %161 {offsets = [0, 96], sizes = [1, 32], strides = [1, 1]} : vector<1x128xf32> to vector<1x32xf32>
    %170 = arith.mulf %163, %146 : vector<1x32xf32>
    %171 = arith.mulf %162, %168 : vector<1x32xf32>
    %172 = arith.addf %170, %171 : vector<1x32xf32>
    %173 = math.tanh %172 : vector<1x32xf32>
    %174 = arith.mulf %169, %173 : vector<1x32xf32>
    %c3_i32_37 = arith.constant 3 : i32
    %175 = vector.broadcast %c3_i32_37 : i32 to vector<8x32xi32>
    %176 = arith.cmpi eq, %75, %175 : vector<8x32xi32>
    %177 = vector.shape_cast %174 : vector<1x32xf32> to vector<1x32xf32>
    %178 = vector.broadcast %177 : vector<1x32xf32> to vector<8x32xf32>
    %179 = arith.select %176, %178, %153 : vector<8x32xi1>, vector<8x32xf32>
    %180 = vector.extract_strided_slice %70 {offsets = [4, 0], sizes = [1, 128], strides = [1, 1]} : vector<8x128xf32> to vector<1x128xf32>
    %cst_38 = arith.constant dense<0.000000e+00> : vector<1x128xf32>
    %181 = tpu.matmul %174, %71, %cst_38 {dimension_numbers = #tpu.dot_dimension_numbers<[1], [0], [0], [1], [0, 0, 1, 1], [], []>} : vector<1x32xf32>, vector<32x128xf32>, vector<1x128xf32> -> vector<1x128xf32>
    %182 = arith.addf %180, %181 : vector<1x128xf32>
    %183 = arith.negf %182 : vector<1x128xf32>
    %184 = math.exp %183 : vector<1x128xf32>
    %cst_39 = arith.constant 1.000000e+00 : f32
    %185 = vector.broadcast %cst_39 : f32 to vector<1x128xf32>
    %186 = arith.addf %185, %184 : vector<1x128xf32>
    %187 = arith.divf %185, %186 : vector<1x128xf32>
    %188 = vector.extract_strided_slice %187 {offsets = [0, 0], sizes = [1, 32], strides = [1, 1]} : vector<1x128xf32> to vector<1x32xf32>
    %189 = vector.extract_strided_slice %187 {offsets = [0, 32], sizes = [1, 32], strides = [1, 1]} : vector<1x128xf32> to vector<1x32xf32>
    %190 = vector.extract_strided_slice %187 {offsets = [0, 64], sizes = [1, 32], strides = [1, 1]} : vector<1x128xf32> to vector<1x32xf32>
    %cst_40 = arith.constant 2.000000e+00 : f32
    %191 = vector.broadcast %cst_40 : f32 to vector<1x32xf32>
    %192 = arith.mulf %191, %190 : vector<1x32xf32>
    %cst_41 = arith.constant 1.000000e+00 : f32
    %193 = vector.broadcast %cst_41 : f32 to vector<1x32xf32>
    %194 = arith.subf %192, %193 : vector<1x32xf32>
    %195 = vector.extract_strided_slice %187 {offsets = [0, 96], sizes = [1, 32], strides = [1, 1]} : vector<1x128xf32> to vector<1x32xf32>
    %196 = arith.mulf %189, %172 : vector<1x32xf32>
    %197 = arith.mulf %188, %194 : vector<1x32xf32>
    %198 = arith.addf %196, %197 : vector<1x32xf32>
    %199 = math.tanh %198 : vector<1x32xf32>
    %200 = arith.mulf %195, %199 : vector<1x32xf32>
    %c4_i32_42 = arith.constant 4 : i32
    %201 = vector.broadcast %c4_i32_42 : i32 to vector<8x32xi32>
    %202 = arith.cmpi eq, %75, %201 : vector<8x32xi32>
    %203 = vector.shape_cast %200 : vector<1x32xf32> to vector<1x32xf32>
    %204 = vector.broadcast %203 : vector<1x32xf32> to vector<8x32xf32>
    %205 = arith.select %202, %204, %179 : vector<8x32xi1>, vector<8x32xf32>
    %206 = vector.extract_strided_slice %70 {offsets = [5, 0], sizes = [1, 128], strides = [1, 1]} : vector<8x128xf32> to vector<1x128xf32>
    %cst_43 = arith.constant dense<0.000000e+00> : vector<1x128xf32>
    %207 = tpu.matmul %200, %71, %cst_43 {dimension_numbers = #tpu.dot_dimension_numbers<[1], [0], [0], [1], [0, 0, 1, 1], [], []>} : vector<1x32xf32>, vector<32x128xf32>, vector<1x128xf32> -> vector<1x128xf32>
    %208 = arith.addf %206, %207 : vector<1x128xf32>
    %209 = arith.negf %208 : vector<1x128xf32>
    %210 = math.exp %209 : vector<1x128xf32>
    %cst_44 = arith.constant 1.000000e+00 : f32
    %211 = vector.broadcast %cst_44 : f32 to vector<1x128xf32>
    %212 = arith.addf %211, %210 : vector<1x128xf32>
    %213 = arith.divf %211, %212 : vector<1x128xf32>
    %214 = vector.extract_strided_slice %213 {offsets = [0, 0], sizes = [1, 32], strides = [1, 1]} : vector<1x128xf32> to vector<1x32xf32>
    %215 = vector.extract_strided_slice %213 {offsets = [0, 32], sizes = [1, 32], strides = [1, 1]} : vector<1x128xf32> to vector<1x32xf32>
    %216 = vector.extract_strided_slice %213 {offsets = [0, 64], sizes = [1, 32], strides = [1, 1]} : vector<1x128xf32> to vector<1x32xf32>
    %cst_45 = arith.constant 2.000000e+00 : f32
    %217 = vector.broadcast %cst_45 : f32 to vector<1x32xf32>
    %218 = arith.mulf %217, %216 : vector<1x32xf32>
    %cst_46 = arith.constant 1.000000e+00 : f32
    %219 = vector.broadcast %cst_46 : f32 to vector<1x32xf32>
    %220 = arith.subf %218, %219 : vector<1x32xf32>
    %221 = vector.extract_strided_slice %213 {offsets = [0, 96], sizes = [1, 32], strides = [1, 1]} : vector<1x128xf32> to vector<1x32xf32>
    %222 = arith.mulf %215, %198 : vector<1x32xf32>
    %223 = arith.mulf %214, %220 : vector<1x32xf32>
    %224 = arith.addf %222, %223 : vector<1x32xf32>
    %225 = math.tanh %224 : vector<1x32xf32>
    %226 = arith.mulf %221, %225 : vector<1x32xf32>
    %c5_i32_47 = arith.constant 5 : i32
    %227 = vector.broadcast %c5_i32_47 : i32 to vector<8x32xi32>
    %228 = arith.cmpi eq, %75, %227 : vector<8x32xi32>
    %229 = vector.shape_cast %226 : vector<1x32xf32> to vector<1x32xf32>
    %230 = vector.broadcast %229 : vector<1x32xf32> to vector<8x32xf32>
    %231 = arith.select %228, %230, %205 : vector<8x32xi1>, vector<8x32xf32>
    %232 = vector.extract_strided_slice %70 {offsets = [6, 0], sizes = [1, 128], strides = [1, 1]} : vector<8x128xf32> to vector<1x128xf32>
    %cst_48 = arith.constant dense<0.000000e+00> : vector<1x128xf32>
    %233 = tpu.matmul %226, %71, %cst_48 {dimension_numbers = #tpu.dot_dimension_numbers<[1], [0], [0], [1], [0, 0, 1, 1], [], []>} : vector<1x32xf32>, vector<32x128xf32>, vector<1x128xf32> -> vector<1x128xf32>
    %234 = arith.addf %232, %233 : vector<1x128xf32>
    %235 = arith.negf %234 : vector<1x128xf32>
    %236 = math.exp %235 : vector<1x128xf32>
    %cst_49 = arith.constant 1.000000e+00 : f32
    %237 = vector.broadcast %cst_49 : f32 to vector<1x128xf32>
    %238 = arith.addf %237, %236 : vector<1x128xf32>
    %239 = arith.divf %237, %238 : vector<1x128xf32>
    %240 = vector.extract_strided_slice %239 {offsets = [0, 0], sizes = [1, 32], strides = [1, 1]} : vector<1x128xf32> to vector<1x32xf32>
    %241 = vector.extract_strided_slice %239 {offsets = [0, 32], sizes = [1, 32], strides = [1, 1]} : vector<1x128xf32> to vector<1x32xf32>
    %242 = vector.extract_strided_slice %239 {offsets = [0, 64], sizes = [1, 32], strides = [1, 1]} : vector<1x128xf32> to vector<1x32xf32>
    %cst_50 = arith.constant 2.000000e+00 : f32
    %243 = vector.broadcast %cst_50 : f32 to vector<1x32xf32>
    %244 = arith.mulf %243, %242 : vector<1x32xf32>
    %cst_51 = arith.constant 1.000000e+00 : f32
    %245 = vector.broadcast %cst_51 : f32 to vector<1x32xf32>
    %246 = arith.subf %244, %245 : vector<1x32xf32>
    %247 = vector.extract_strided_slice %239 {offsets = [0, 96], sizes = [1, 32], strides = [1, 1]} : vector<1x128xf32> to vector<1x32xf32>
    %248 = arith.mulf %241, %224 : vector<1x32xf32>
    %249 = arith.mulf %240, %246 : vector<1x32xf32>
    %250 = arith.addf %248, %249 : vector<1x32xf32>
    %251 = math.tanh %250 : vector<1x32xf32>
    %252 = arith.mulf %247, %251 : vector<1x32xf32>
    %c6_i32_52 = arith.constant 6 : i32
    %253 = vector.broadcast %c6_i32_52 : i32 to vector<8x32xi32>
    %254 = arith.cmpi eq, %75, %253 : vector<8x32xi32>
    %255 = vector.shape_cast %252 : vector<1x32xf32> to vector<1x32xf32>
    %256 = vector.broadcast %255 : vector<1x32xf32> to vector<8x32xf32>
    %257 = arith.select %254, %256, %231 : vector<8x32xi1>, vector<8x32xf32>
    %258 = vector.extract_strided_slice %70 {offsets = [7, 0], sizes = [1, 128], strides = [1, 1]} : vector<8x128xf32> to vector<1x128xf32>
    %cst_53 = arith.constant dense<0.000000e+00> : vector<1x128xf32>
    %259 = tpu.matmul %252, %71, %cst_53 {dimension_numbers = #tpu.dot_dimension_numbers<[1], [0], [0], [1], [0, 0, 1, 1], [], []>} : vector<1x32xf32>, vector<32x128xf32>, vector<1x128xf32> -> vector<1x128xf32>
    %260 = arith.addf %258, %259 : vector<1x128xf32>
    %261 = arith.negf %260 : vector<1x128xf32>
    %262 = math.exp %261 : vector<1x128xf32>
    %cst_54 = arith.constant 1.000000e+00 : f32
    %263 = vector.broadcast %cst_54 : f32 to vector<1x128xf32>
    %264 = arith.addf %263, %262 : vector<1x128xf32>
    %265 = arith.divf %263, %264 : vector<1x128xf32>
    %266 = vector.extract_strided_slice %265 {offsets = [0, 0], sizes = [1, 32], strides = [1, 1]} : vector<1x128xf32> to vector<1x32xf32>
    %267 = vector.extract_strided_slice %265 {offsets = [0, 32], sizes = [1, 32], strides = [1, 1]} : vector<1x128xf32> to vector<1x32xf32>
    %268 = vector.extract_strided_slice %265 {offsets = [0, 64], sizes = [1, 32], strides = [1, 1]} : vector<1x128xf32> to vector<1x32xf32>
    %cst_55 = arith.constant 2.000000e+00 : f32
    %269 = vector.broadcast %cst_55 : f32 to vector<1x32xf32>
    %270 = arith.mulf %269, %268 : vector<1x32xf32>
    %cst_56 = arith.constant 1.000000e+00 : f32
    %271 = vector.broadcast %cst_56 : f32 to vector<1x32xf32>
    %272 = arith.subf %270, %271 : vector<1x32xf32>
    %273 = vector.extract_strided_slice %265 {offsets = [0, 96], sizes = [1, 32], strides = [1, 1]} : vector<1x128xf32> to vector<1x32xf32>
    %274 = arith.mulf %267, %250 : vector<1x32xf32>
    %275 = arith.mulf %266, %272 : vector<1x32xf32>
    %276 = arith.addf %274, %275 : vector<1x32xf32>
    %277 = math.tanh %276 : vector<1x32xf32>
    %278 = arith.mulf %273, %277 : vector<1x32xf32>
    %c7_i32_57 = arith.constant 7 : i32
    %279 = vector.broadcast %c7_i32_57 : i32 to vector<8x32xi32>
    %280 = arith.cmpi eq, %75, %279 : vector<8x32xi32>
    %281 = vector.shape_cast %278 : vector<1x32xf32> to vector<1x32xf32>
    %282 = vector.broadcast %281 : vector<1x32xf32> to vector<8x32xf32>
    %283 = arith.select %280, %282, %257 : vector<8x32xi1>, vector<8x32xf32>
    %c0_58 = arith.constant 0 : index
    %c0_59 = arith.constant 0 : index
    %284 = vector.load %arg5[%c0_58, %c0_59] : memref<32x8xf32, #tpu.memory_space<vmem>>, vector<32x8xf32>
    %cst_60 = arith.constant dense<0.000000e+00> : vector<8x8xf32>
    %285 = tpu.matmul %283, %284, %cst_60 {dimension_numbers = #tpu.dot_dimension_numbers<[1], [0], [0], [1], [0, 0, 1, 1], [], []>} : vector<8x32xf32>, vector<32x8xf32>, vector<8x8xf32> -> vector<8x8xf32>
    %c0_61 = arith.constant 0 : index
    %c0_62 = arith.constant 0 : index
    %286 = vector.load %arg6[%c0_61, %c0_62] : memref<1x8xf32, #tpu.memory_space<vmem>>, vector<1x8xf32>
    %287 = vector.broadcast %286 : vector<1x8xf32> to vector<8x8xf32>
    %288 = arith.addf %285, %287 : vector<8x8xf32>
    %cst_63 = arith.constant dense<0xFF800000> : vector<8xf32>
    %289 = vector.multi_reduction <maximumf>, %288, %cst_63 [1] : vector<8x8xf32> to vector<8xf32>
    %290 = vector.shape_cast %289 : vector<8xf32> to vector<8x1xf32>
    %291 = vector.broadcast %290 : vector<8x1xf32> to vector<8x8xf32>
    %292 = arith.subf %288, %291 : vector<8x8xf32>
    %293 = math.exp %292 : vector<8x8xf32>
    %cst_64 = arith.constant dense<0.000000e+00> : vector<8xf32>
    %294 = vector.multi_reduction <add>, %293, %cst_64 [1] : vector<8x8xf32> to vector<8xf32>
    %295 = vector.shape_cast %294 : vector<8xf32> to vector<8x1xf32>
    %296 = math.log %295 : vector<8x1xf32>
    %297 = vector.broadcast %296 : vector<8x1xf32> to vector<8x8xf32>
    %298 = arith.subf %292, %297 : vector<8x8xf32>
    %c0_65 = arith.constant 0 : index
    %c0_66 = arith.constant 0 : index
    %299 = vector.load %arg7[%c0_65, %c0_66] : memref<8x8xf32, #tpu.memory_space<vmem>>, vector<8x8xf32>
    tpu.vector_store %arg7[%c0_65, %c0_66], %298 {strides = array<i32>} : memref<8x8xf32, #tpu.memory_space<vmem>>, vector<8x8xf32>,
    return
  }
}

</mosaic_0001>

<bundles_post_ra>
// kernel: tpu_custom_call.1
= control target key start
LH: loop header
LB: loop body
LE: loop exit
PB: predicated region body
PF: predicated region fallthrough
CT: control target
= control target key end

     0   :  { %12 = vsyncpa [#allocation4], 0  ;;  %s1863_s0 = inlined_call_operand.vmem [shape: s32[8], index: 0, kind: input, shape index: {}]   ;;  %s1864_s1 = inlined_call_operand.vmem [shape: f32[50,32], index: 1, kind: input, shape index: {}]   ;;  %s1865_s2 = inlined_call_operand.vmem [shape: f32[32,128], index: 2, kind: input, shape index: {}]   ;;  %s1866_s3 = inlined_call_operand.vmem [shape: f32[32,128], index: 3, kind: input, shape index: {}]   ;;  %s1867_s4 = inlined_call_operand.vmem [shape: f32[1,128], index: 4, kind: input, shape index: {}]   ;;  %s1868_s5 = inlined_call_operand.vmem [shape: f32[32,8], index: 5, kind: input, shape index: {}]   ;;  %s1869_s6 = inlined_call_operand.vmem [shape: f32[1,8], index: 6, kind: input, shape index: {}]   ;;  %s1870_s7 = inlined_call_operand.hbm [shape: f32[8,8], index: 7, kind: output, shape index: {}]  }
   0x1   :  { %13 = vsyncpa [#allocation3], 0  ;;  %s20_s26 = sshll.u32 %s1863_s0, 4  ;;  %s21_s26 = int_to_ptr.vmem [resolvable:$true] %s20_s26 }
   0x2   :  { %s1480_s27 = scalar_lea.vmem %s21_s26, 16  ;;  %p1485_p1 = scmp.lt.s32.totalorder %s21_s26, %s21_s26 }
   0x3   :  { %p1481_p0 = scmp.ne.s32.totalorder %s21_s26, %s1480_s27  ;;  %p1486_p2 = scmp.lt.s32.totalorder %s1480_s27, %s1480_s27 }
   0x5   :  { %p1487_p3 = por %p1486_p2, %p1485_p1 }
   0x7   :  { %p1488_p4 = pnand %p1487_p3, %p1481_p0 }
   0x9   :  { %1491 = shalt.err (!%p1488_p4)
}
   0xa   :  { %s1516_s28 = smov [#allocation2]  }
   0xb   :  { %23 = dma.vmem_to_smem %s21_s26, 16, %s1516_s28, [#allocation4]  }
   0xc   :  { %1512 = dma.done.wait [#allocation4], 16  }
   0xd   :  { %1513 = vsyncadd [#allocation4], 4294967280 }
   0xe   :  { %39 = sfence }
   0xf   :  { %v117_v0 = vld [vmem:[%s1865_s2 + $0x18] sm:$0xff]  ;;  %v40_v2 = vlaneseq  ;;  %v1517_v3 = vmov 0.0   ;;  %v116_v4 = vld [vmem:[%s1865_s2 + $0x10] sm:$0xff]  ;;  %s1583_s13 = sld [smem:[#allocation2]]  ;;  %v115_v7 = vld [vmem:[%s1865_s2 + $0x8] sm:$0xff]  ;;  %vm1518_vm2 = vmmov 0  }
  0x10   :  { %v1571_v1 = vld [vmem:[%s1866_s3 + $0x18] sm:$0xff]  ;;  %1312 = vmatprep.subr.mxu0 %v1517_v3  ;;  %1323 = vmatprep.subr.mxu1 %v1517_v3  ;;  %v1581_v5 = vld [vmem:[%s1866_s3 + $0x10] sm:$0xff]  ;;  %s1588_s14 = sld [smem:[#allocation2 + $0x1]]  ;;  %v1598_v8 = vld [vmem:[%s1866_s3 + $0x8] sm:$0xff]  ;;  %vm125_vm9 = vcmask 261120   ;;  %s1519_s27 = smov 64  }
  0x11   :  { %1313 = vmatpush3.msra.mxu0 %v117_v0  ;;  %1324 = vmatpush3.msra.mxu1 %v1571_v1  ;;  %v1586_v6 = vshrl.u32 %v40_v2, 7  ;;  %s1600_s19 = sld [smem:[#allocation2 + $0x2]]  ;;  %v114_v9 = vld [vmem:[%s1865_s2] sm:$0xff]  ;;  %vm1183_vm10 = vcmask 64512   ;;  %s1521_s12 = smov [#allocation5]  }
  0x12   :  { %1314 = vmatprep.subr.mxu0 %v1517_v3  ;;  %1325 = vmatprep.subr.mxu1 %v1517_v3  ;;  %s1603_s20 = sld [smem:[#allocation2 + $0x3]]  ;;  %v1616_v10 = vld [vmem:[%s1866_s3] sm:$0xff] }
  0x13   :  { %1315 = vmatpush3.msra.mxu0 %v116_v4  ;;  %1326 = vmatpush3.msra.mxu1 %v1581_v5  ;;  %s1610_s23 = sld [smem:[#allocation2 + $0x4]]  ;;  %vm45_vm0 = vcmp.eq.s32.totalorder %v1586_v6, 0  ;;  %vm54_vm1 = vcmp.eq.s32.totalorder %v1586_v6, 1  ;;  %vm63_vm3 = vcmp.eq.s32.totalorder %v1586_v6, 2  ;;  %vm72_vm4 = vcmp.eq.s32.totalorder %v1586_v6, 3 }
  0x14   :  { %1316 = vmatprep.subr.mxu0 %v1517_v3  ;;  %1327 = vmatprep.subr.mxu1 %v1517_v3  ;;  %s1619_s26 = sld [smem:[#allocation2 + $0x5]]  ;;  %vm81_vm5 = vcmp.eq.s32.totalorder %v1586_v6, 4  ;;  %vm90_vm6 = vcmp.eq.s32.totalorder %v1586_v6, 5  ;;  %vm99_vm7 = vcmp.eq.s32.totalorder %v1586_v6, 6  ;;  %vm108_vm8 = vcmp.eq.s32.totalorder %v1586_v6, 7 }
  0x15   :  { %1317 = vmatpush3.msra.mxu0 %v115_v7  ;;  %1328 = vmatpush3.msra.mxu1 %v1598_v8  ;;  %s43_s28 = scalar_lea.vmem %s1864_s1, %s1583_s13  ;;  %s1628_s29 = sld [smem:[#allocation2 + $0x6]]  ;;  %v1235_v29 = vld [vmem:[%s1867_s4] ss:$0 sm:$0xff]  ;;  %v304_v4 = vsub.s32 0, %v1586_v6  ;;  %v416_v7 = vsub.s32 1, %v1586_v6 }
  0x16   :  { %1318 = vmatprep.subr.mxu0 %v1517_v3  ;;  %1329 = vmatprep.subr.mxu1 %v1517_v3  ;;  %v1220_v11 = vld [vmem:[%s43_s28] ss:$0 sm:$0xff]  ;;  %s52_s8 = scalar_lea.vmem %s1864_s1, %s1588_s14  ;;  %s1637_s9 = sld [smem:[#allocation2 + $0x7]] }
  0x17   :  { %1319 = vmatpush3.msra.mxu0 %v114_v9  ;;  %1320 = vmatprep.mubr.msk.f32.mxu0 %vm1518_vm2, %v1517_v3  ;;  %v50_v12 = vsel %vm45_vm0, %v1220_v11, 0.0  ;;  %v1222_v13 = vld [vmem:[%s52_s8] ss:$0 sm:$0xff]  ;;  %s61_s11 = scalar_lea.vmem %s1864_s1, %s1600_s19  ;;  %s1520_s4 = smov 32  }
  0x18   :  { %1330 = vmatpush3.msra.mxu1 %v1616_v10  ;;  %1331 = vmatprep.mubr.msk.f32.mxu1 %vm1518_vm2, %v1517_v3  ;;  %v59_v14 = vsel %vm54_vm1, %v1222_v13, %v50_v12  ;;  %v1224_v15 = vld [vmem:[%s61_s11] ss:$0 sm:$0xff]  ;;  %s70_s14 = scalar_lea.vmem %s1864_s1, %s1603_s20 }
  0x19   :  { %1332 = vmatmul.mubr.f32.vlgmr.msra.gmra.mxu1 %v1517_v3  ;;  %1334 = vmatprep.subr.mxu0 %v1517_v3  ;;  %v68_v16 = vsel %vm63_vm3, %v1224_v15, %v59_v14  ;;  %v1226_v17 = vld [vmem:[%s70_s14] ss:$0 sm:$0xff]  ;;  %s79_s17 = scalar_lea.vmem %s1864_s1, %s1610_s23 }
  0x1a   :  { %1345 = vmatprep.subr.mxu1 %v1517_v3  ;;  %1353 = vmatprep.mubr.msk.f32.mxu1 %vm1518_vm2, %v1517_v3  ;;  %v77_v18 = vsel %vm72_vm4, %v1226_v17, %v68_v16  ;;  %v1228_v19 = vld [vmem:[%s79_s17] ss:$0 sm:$0xff]  ;;  %s88_s20 = scalar_lea.vmem %s1864_s1, %s1619_s26 }
  0x1b   :  { %1346 = vmatpush3.msra.mxu1 %v1571_v1  ;;  %v86_v20 = vsel %vm81_vm5, %v1228_v19, %v77_v18  ;;  %v1230_v21 = vld [vmem:[%s88_s20] ss:$0 sm:$0xff]  ;;  %s97_s23 = scalar_lea.vmem %s1864_s1, %s1628_s29 }
  0x1c   :  { %1347 = vmatprep.subr.mxu1 %v1517_v3  ;;  %v95_v22 = vsel %vm90_vm6, %v1230_v21, %v86_v20  ;;  %v1232_v23 = vld [vmem:[%s97_s23] ss:$0 sm:$0xff]  ;;  %s106_s26 = scalar_lea.vmem %s1864_s1, %s1637_s9 }
  0x1d   :  { %1348 = vmatpush3.msra.mxu1 %v1581_v5  ;;  %v104_v24 = vsel %vm99_vm7, %v1232_v23, %v95_v22  ;;  %v1234_v25 = vld [vmem:[%s106_s26] ss:$0 sm:$0xff] }
  0x1e   :  { %1349 = vmatprep.subr.mxu1 %v1517_v3  ;;  %v113_v26 = vsel %vm108_vm8, %v1234_v25, %v104_v24 }
  0x1f   :  { %1350 = vmatpush3.msra.mxu1 %v1598_v8  ;;  %1321 = vmatmul.mubr.msk.f32.vlgmr.msra.gmra.mxu0 %vm125_vm9, %v113_v26 }
  0x20   :  { %1351 = vmatprep.subr.mxu1 %v1517_v3  ;;  %1335 = vmatpush3.msra.mxu0 %v1571_v1 }
  0x21   :  { %1342 = vmatprep.mubr.msk.f32.mxu0 %vm1518_vm2, %v1517_v3  ;;  %1336 = vmatprep.subr.mxu0 %v1517_v3 }
  0x22   :  { %1352 = vmatpush3.msra.mxu1 %v1616_v10  ;;  %1337 = vmatpush3.msra.mxu0 %v1581_v5 }
  0x23   :  { %1367 = vmatprep.subr.mxu1 %v1517_v3  ;;  %1338 = vmatprep.subr.mxu0 %v1517_v3 }
  0x24   :  { %1339 = vmatpush3.msra.mxu0 %v1598_v8 }
  0x25   :  { %1340 = vmatprep.subr.mxu0 %v1517_v3 }
  0x26   :  { %1341 = vmatpush3.msra.mxu0 %v1616_v10 }
  0x27   :  { %1356 = vmatprep.subr.mxu0 %v1517_v3 }
  0xd9   :  { %v272_v27 = vpop.f32.mrf.mxu1 }
  0xdb   :  { %v1333_v28 = vpop.f32.mrf.mxu1 }
  0xdf   :  { %v195_v30 = vpop.f32.mrf.mxu0 }
  0xe0   :  { %v1714_v31 = vadd.f32 %v1235_v29, %v195_v30 }
  0xe1   :  { %v1322_v32 = vpop.f32.mrf.mxu0 }
  0xe2   :  { %v276_v33 = vadd.f32 %v272_v27, %v1714_v31 }
  0xe4   :  { %v1237_v34 = vmul.f32 -1.442695, %v276_v33 }
  0xe6   :  { %1428 = vpow2.f32 %v1237_v34 }
  0xf3   :  { %v1429_v35 = vpop.eup %1428 }
  0xf4   :  { %v280_v36 = vadd.f32 1.0, %v1429_v35 }
  0xf6   :  { %1430 = vrcp.f32 %v280_v36  ;;  %v529_v36 = vsub.s32 2, %v1586_v6 }
 0x103   :  { %v1431_v37 = vpop.eup %1430 }
 0x104   :  { %v283_v38 = vmul.f32 2.0, %v1431_v37  ;;  %v285_v42 = vmul.f32 0.0, %v1431_v37 }
 0x106   :  { %v1238_v39 = vadd.f32 -1.0, %v283_v38 }
 0x108   :  { %287 = vrot.lane.b32.xlu0 %v1238_v39, %s1519_s27 }
 0x17a   :  { %v288_v40 = vpop.permute.xlu0 %287 }
 0x17b   :  { %v290_v41 = vmul.f32 %v1431_v37, %v288_v40 }
 0x17d   :  { %292 = vrot.lane.b32.xlu0 %v290_v41, %s1520_s4 }
 0x1ef   :  { %v293_v43 = vpop.permute.xlu0 %292 }
 0x1f0   :  { %v295_v44 = vadd.f32 %v293_v43, %v285_v42 }
 0x1f2   :  { %1432 = vtanh.f32 %v295_v44  ;;  %v395_v61 = vrot.slane %v295_v44, 7 }
 0x1ff   :  { %v1433_v45 = vpop.eup %1432 }
 0x200   :  { %298 = vrot.lane.b32.xlu1 %v1433_v45, %s1519_s27 }
 0x272   :  { %v299_v46 = vpop.permute.xlu1 %298 }
 0x273   :  { %v301_v47 = vmul.f32 %v1431_v37, %v299_v46 }
 0x275   :  { %308 = vrot.lane.b32.xlu1 %v301_v47, %s1520_s4  ;;  %v305_v9 = vrot.slane %v301_v47, %v304_v4 }
 0x277   :  { %v306_v15 = vsel %vm45_vm0, %v305_v9, 0.0 }
 0x2e7   :  { %v309_v48 = vpop.permute.xlu1 %308 }
 0x2e8   :  { %1343 = vmatmul.mubr.msk.f32.vlgmr.msra.gmra.mxu0 %vm125_vm9, %v309_v48 }
 0x2e9   :  { %1357 = vmatpush3.msra.mxu0 %v1571_v1  ;;  %1364 = vmatprep.mubr.msk.f32.mxu0 %vm1518_vm2, %v1517_v3 }
 0x2ea   :  { %1358 = vmatprep.subr.mxu0 %v1517_v3 }
 0x2eb   :  { %1359 = vmatpush3.msra.mxu0 %v1581_v5 }
 0x2ec   :  { %1360 = vmatprep.subr.mxu0 %v1517_v3 }
 0x2ed   :  { %1361 = vmatpush3.msra.mxu0 %v1598_v8 }
 0x2ee   :  { %1362 = vmatprep.subr.mxu0 %v1517_v3 }
 0x2ef   :  { %1363 = vmatpush3.msra.mxu0 %v1616_v10 }
 0x2f0   :  { %1378 = vmatprep.subr.mxu0 %v1517_v3 }
 0x3a8   :  { %v378_v49 = vpop.f32.mrf.mxu0 }
 0x3a9   :  { %v383_v50 = vrot.slane %v378_v49, 7 }
 0x3aa   :  { %v1344_v51 = vpop.f32.mrf.mxu0 }
 0x3ab   :  { %v385_v52 = vadd.f32 %v383_v50, %v1714_v31 }
 0x3ad   :  { %v1240_v53 = vmul.f32 -1.442695, %v385_v52 }
 0x3af   :  { %1434 = vpow2.f32 %v1240_v53 }
 0x3bc   :  { %v1435_v54 = vpop.eup %1434 }
 0x3bd   :  { %v389_v55 = vadd.f32 1.0, %v1435_v54 }
 0x3bf   :  { %1436 = vrcp.f32 %v389_v55 }
 0x3cc   :  { %v1437_v56 = vpop.eup %1436 }
 0x3cd   :  { %v392_v57 = vmul.f32 2.0, %v1437_v56  ;;  %v397_v62 = vmul.f32 %v1437_v56, %v395_v61 }
 0x3cf   :  { %v1241_v58 = vadd.f32 -1.0, %v392_v57 }
 0x3d1   :  { %399 = vrot.lane.b32.xlu0 %v1241_v58, %s1519_s27 }
 0x443   :  { %v400_v59 = vpop.permute.xlu0 %399 }
 0x444   :  { %v402_v60 = vmul.f32 %v1437_v56, %v400_v59 }
 0x446   :  { %404 = vrot.lane.b32.xlu1 %v402_v60, %s1520_s4  ;;  %v642_v60 = vsub.s32 3, %v1586_v6 }
 0x4b8   :  { %v405_v63 = vpop.permute.xlu1 %404 }
 0x4b9   :  { %v407_v0 = vadd.f32 %v405_v63, %v397_v62 }
 0x4bb   :  { %1438 = vtanh.f32 %v407_v0  ;;  %v508_v30 = vrot.slane %v407_v0, 7 }
 0x4c8   :  { %v1439_v2 = vpop.eup %1438 }
 0x4c9   :  { %410 = vrot.lane.b32.xlu0 %v1439_v2, %s1519_s27 }
 0x53b   :  { %v411_v11 = vpop.permute.xlu0 %410 }
 0x53c   :  { %v413_v12 = vmul.f32 %v1437_v56, %v411_v11 }
 0x53e   :  { %v417_v13 = vrot.slane %v413_v12, %v416_v7  ;;  %v420_v14 = vrot.slane %v413_v12, 1 }
 0x540   :  { %v418_v16 = vsel %vm54_vm1, %v417_v13, %v306_v15  ;;  %421 = vrot.lane.b32.xlu1 %v420_v14, %s1520_s4 }
 0x5b2   :  { %v422_v17 = vpop.permute.xlu1 %421 }
 0x5b3   :  { %1354 = vmatmul.mubr.msk.f32.vlgmr.msra.gmra.mxu1 %vm125_vm9, %v422_v17 }
 0x5b4   :  { %1368 = vmatpush3.msra.mxu1 %v1571_v1  ;;  %1375 = vmatprep.mubr.msk.f32.mxu1 %vm1518_vm2, %v1517_v3 }
 0x5b5   :  { %1369 = vmatprep.subr.mxu1 %v1517_v3 }
 0x5b6   :  { %1370 = vmatpush3.msra.mxu1 %v1581_v5 }
 0x5b7   :  { %1371 = vmatprep.subr.mxu1 %v1517_v3 }
 0x5b8   :  { %1372 = vmatpush3.msra.mxu1 %v1598_v8 }
 0x5b9   :  { %1373 = vmatprep.subr.mxu1 %v1517_v3 }
 0x5ba   :  { %1374 = vmatpush3.msra.mxu1 %v1616_v10 }
 0x5bb   :  { %1389 = vmatprep.subr.mxu1 %v1517_v3 }
 0x673   :  { %v491_v18 = vpop.f32.mrf.mxu1 }
 0x674   :  { %v496_v19 = vrot.slane %v491_v18, 6 }
 0x675   :  { %v1355_v20 = vpop.f32.mrf.mxu1 }
 0x676   :  { %v498_v21 = vadd.f32 %v496_v19, %v1714_v31 }
 0x678   :  { %v1243_v22 = vmul.f32 -1.442695, %v498_v21 }
 0x67a   :  { %1440 = vpow2.f32 %v1243_v22 }
 0x687   :  { %v1441_v23 = vpop.eup %1440 }
 0x688   :  { %v502_v24 = vadd.f32 1.0, %v1441_v23 }
 0x68a   :  { %1442 = vrcp.f32 %v502_v24 }
 0x697   :  { %v1443_v25 = vpop.eup %1442 }
 0x698   :  { %v505_v26 = vmul.f32 2.0, %v1443_v25  ;;  %v510_v32 = vmul.f32 %v1443_v25, %v508_v30 }
 0x69a   :  { %v1244_v27 = vadd.f32 -1.0, %v505_v26  ;;  %v755_v26 = vsub.s32 4, %v1586_v6 }
 0x69c   :  { %512 = vrot.lane.b32.xlu0 %v1244_v27, %s1519_s27 }
 0x70e   :  { %v513_v28 = vpop.permute.xlu0 %512 }
 0x70f   :  { %v515_v29 = vmul.f32 %v1443_v25, %v513_v28 }
 0x711   :  { %517 = vrot.lane.b32.xlu1 %v515_v29, %s1520_s4 }
 0x783   :  { %v518_v33 = vpop.permute.xlu1 %517 }
 0x784   :  { %v520_v34 = vadd.f32 %v518_v33, %v510_v32 }
 0x786   :  { %1444 = vtanh.f32 %v520_v34  ;;  %v621_v55 = vrot.slane %v520_v34, 7 }
 0x793   :  { %v1445_v35 = vpop.eup %1444 }
 0x794   :  { %523 = vrot.lane.b32.xlu0 %v1445_v35, %s1519_s27 }
 0x806   :  { %v524_v37 = vpop.permute.xlu0 %523 }
 0x807   :  { %v526_v38 = vmul.f32 %v1443_v25, %v524_v37 }
 0x809   :  { %v530_v39 = vrot.slane %v526_v38, %v529_v36  ;;  %v533_v40 = vrot.slane %v526_v38, 2 }
 0x80b   :  { %v531_v41 = vsel %vm63_vm3, %v530_v39, %v418_v16  ;;  %534 = vrot.lane.b32.xlu1 %v533_v40, %s1520_s4 }
 0x87d   :  { %v535_v42 = vpop.permute.xlu1 %534 }
 0x87e   :  { %1365 = vmatmul.mubr.msk.f32.vlgmr.msra.gmra.mxu0 %vm125_vm9, %v535_v42 }
 0x87f   :  { %1379 = vmatpush3.msra.mxu0 %v1571_v1  ;;  %1386 = vmatprep.mubr.msk.f32.mxu0 %vm1518_vm2, %v1517_v3 }
 0x880   :  { %1380 = vmatprep.subr.mxu0 %v1517_v3 }
 0x881   :  { %1381 = vmatpush3.msra.mxu0 %v1581_v5 }
 0x882   :  { %1382 = vmatprep.subr.mxu0 %v1517_v3 }
 0x883   :  { %1383 = vmatpush3.msra.mxu0 %v1598_v8 }
 0x884   :  { %1384 = vmatprep.subr.mxu0 %v1517_v3 }
 0x885   :  { %1385 = vmatpush3.msra.mxu0 %v1616_v10 }
 0x886   :  { %1400 = vmatprep.subr.mxu0 %v1517_v3 }
 0x93e   :  { %v604_v43 = vpop.f32.mrf.mxu0 }
 0x93f   :  { %v609_v44 = vrot.slane %v604_v43, 5 }
 0x940   :  { %v1366_v45 = vpop.f32.mrf.mxu0 }
 0x941   :  { %v611_v46 = vadd.f32 %v609_v44, %v1714_v31 }
 0x943   :  { %v1246_v47 = vmul.f32 -1.442695, %v611_v46 }
 0x945   :  { %1446 = vpow2.f32 %v1246_v47  ;;  %v868_v47 = vsub.s32 5, %v1586_v6 }
 0x952   :  { %v1447_v48 = vpop.eup %1446 }
 0x953   :  { %v615_v49 = vadd.f32 1.0, %v1447_v48 }
 0x955   :  { %1448 = vrcp.f32 %v615_v49 }
 0x962   :  { %v1449_v50 = vpop.eup %1448 }
 0x963   :  { %v618_v51 = vmul.f32 2.0, %v1449_v50  ;;  %v623_v56 = vmul.f32 %v1449_v50, %v621_v55 }
 0x965   :  { %v1247_v52 = vadd.f32 -1.0, %v618_v51 }
 0x967   :  { %625 = vrot.lane.b32.xlu0 %v1247_v52, %s1519_s27 }
 0x9d9   :  { %v626_v53 = vpop.permute.xlu0 %625 }
 0x9da   :  { %v628_v54 = vmul.f32 %v1449_v50, %v626_v53 }
 0x9dc   :  { %630 = vrot.lane.b32.xlu1 %v628_v54, %s1520_s4 }
 0xa4e   :  { %v631_v57 = vpop.permute.xlu1 %630 }
 0xa4f   :  { %v633_v58 = vadd.f32 %v631_v57, %v623_v56 }
 0xa51   :  { %1450 = vtanh.f32 %v633_v58  ;;  %v734_v21 = vrot.slane %v633_v58, 7 }
 0xa5e   :  { %v1451_v59 = vpop.eup %1450 }
 0xa5f   :  { %636 = vrot.lane.b32.xlu0 %v1451_v59, %s1519_s27 }
 0xad1   :  { %v637_v61 = vpop.permute.xlu0 %636 }
 0xad2   :  { %v639_v62 = vmul.f32 %v1449_v50, %v637_v61 }
 0xad4   :  { %v643_v63 = vrot.slane %v639_v62, %v642_v60  ;;  %v646_v0 = vrot.slane %v639_v62, 3 }
 0xad6   :  { %v644_v2 = vsel %vm72_vm4, %v643_v63, %v531_v41  ;;  %647 = vrot.lane.b32.xlu1 %v646_v0, %s1520_s4 }
 0xb48   :  { %v648_v4 = vpop.permute.xlu1 %647 }
 0xb49   :  { %1376 = vmatmul.mubr.msk.f32.vlgmr.msra.gmra.mxu1 %vm125_vm9, %v648_v4 }
 0xb4a   :  { %1390 = vmatpush3.msra.mxu1 %v1571_v1  ;;  %1397 = vmatprep.mubr.msk.f32.mxu1 %vm1518_vm2, %v1517_v3 }
 0xb4b   :  { %1391 = vmatprep.subr.mxu1 %v1517_v3 }
 0xb4c   :  { %1392 = vmatpush3.msra.mxu1 %v1581_v5 }
 0xb4d   :  { %1393 = vmatprep.subr.mxu1 %v1517_v3 }
 0xb4e   :  { %1394 = vmatpush3.msra.mxu1 %v1598_v8 }
 0xb4f   :  { %1395 = vmatprep.subr.mxu1 %v1517_v3 }
 0xb50   :  { %1396 = vmatpush3.msra.mxu1 %v1616_v10 }
 0xb51   :  { %1411 = vmatprep.subr.mxu1 %v1517_v3 }
 0xc09   :  { %v717_v7 = vpop.f32.mrf.mxu1 }
 0xc0a   :  { %v722_v9 = vrot.slane %v717_v7, 4 }
 0xc0b   :  { %v1377_v11 = vpop.f32.mrf.mxu1 }
 0xc0c   :  { %v724_v12 = vadd.f32 %v722_v9, %v1714_v31 }
 0xc0e   :  { %v1249_v13 = vmul.f32 -1.442695, %v724_v12 }
 0xc10   :  { %1452 = vpow2.f32 %v1249_v13  ;;  %v981_v13 = vsub.s32 6, %v1586_v6 }
 0xc1d   :  { %v1453_v14 = vpop.eup %1452 }
 0xc1e   :  { %v728_v15 = vadd.f32 1.0, %v1453_v14 }
 0xc20   :  { %1454 = vrcp.f32 %v728_v15 }
 0xc2d   :  { %v1455_v16 = vpop.eup %1454 }
 0xc2e   :  { %v731_v17 = vmul.f32 2.0, %v1455_v16  ;;  %v736_v22 = vmul.f32 %v1455_v16, %v734_v21 }
 0xc30   :  { %v1250_v18 = vadd.f32 -1.0, %v731_v17 }
 0xc32   :  { %738 = vrot.lane.b32.xlu0 %v1250_v18, %s1519_s27 }
 0xca4   :  { %v739_v19 = vpop.permute.xlu0 %738 }
 0xca5   :  { %v741_v20 = vmul.f32 %v1455_v16, %v739_v19 }
 0xca7   :  { %743 = vrot.lane.b32.xlu1 %v741_v20, %s1520_s4 }
 0xd19   :  { %v744_v23 = vpop.permute.xlu1 %743 }
 0xd1a   :  { %v746_v24 = vadd.f32 %v744_v23, %v736_v22 }
 0xd1c   :  { %1456 = vtanh.f32 %v746_v24 }
 0xd29   :  { %v1457_v25 = vpop.eup %1456 }
 0xd2a   :  { %749 = vrot.lane.b32.xlu0 %v1457_v25, %s1519_s27 }
 0xd9c   :  { %v750_v27 = vpop.permute.xlu0 %749 }
 0xd9d   :  { %v752_v28 = vmul.f32 %v1455_v16, %v750_v27 }
 0xd9f   :  { %v756_v29 = vrot.slane %v752_v28, %v755_v26  ;;  %v759_v30 = vrot.slane %v752_v28, 4 }
 0xda1   :  { %v757_v32 = vsel %vm81_vm5, %v756_v29, %v644_v2  ;;  %760 = vrot.lane.b32.xlu1 %v759_v30, %s1520_s4 }
 0xe13   :  { %v761_v33 = vpop.permute.xlu1 %760 }
 0xe14   :  { %1387 = vmatmul.mubr.msk.f32.vlgmr.msra.gmra.mxu0 %vm125_vm9, %v761_v33 }
 0xe15   :  { %1401 = vmatpush3.msra.mxu0 %v1571_v1  ;;  %1408 = vmatprep.mubr.msk.f32.mxu0 %vm1518_vm2, %v1517_v3 }
 0xe16   :  { %1402 = vmatprep.subr.mxu0 %v1517_v3 }
 0xe17   :  { %1403 = vmatpush3.msra.mxu0 %v1581_v5 }
 0xe18   :  { %1404 = vmatprep.subr.mxu0 %v1517_v3 }
 0xe19   :  { %1405 = vmatpush3.msra.mxu0 %v1598_v8 }
 0xe1a   :  { %1406 = vmatprep.subr.mxu0 %v1517_v3 }
 0xe1b   :  { %1407 = vmatpush3.msra.mxu0 %v1616_v10  ;;  %v847_v10 = vrot.slane %v746_v24, 7 }
 0xed4   :  { %v830_v34 = vpop.f32.mrf.mxu0 }
 0xed5   :  { %v835_v35 = vrot.slane %v830_v34, 3 }
 0xed6   :  { %v1388_v36 = vpop.f32.mrf.mxu0 }
 0xed7   :  { %v837_v1 = vadd.f32 %v835_v35, %v1714_v31 }
 0xed9   :  { %v1252_v37 = vmul.f32 -1.442695, %v837_v1  ;;  %v1099_v1 = vld [vmem:[%s1868_s5 + $0x10] sm:$0xff] }
 0xedb   :  { %1458 = vpow2.f32 %v1252_v37  ;;  %v1098_v37 = vld [vmem:[%s1868_s5 + $0x8] sm:$0xff] }
 0xee8   :  { %v1459_v38 = vpop.eup %1458 }
 0xee9   :  { %v841_v39 = vadd.f32 1.0, %v1459_v38  ;;  %v1097_v38 = vld [vmem:[%s1868_s5] sm:$0xff] }
 0xeeb   :  { %1460 = vrcp.f32 %v841_v39 }
 0xef8   :  { %v1461_v40 = vpop.eup %1460 }
 0xef9   :  { %v844_v5 = vmul.f32 2.0, %v1461_v40  ;;  %v849_v43 = vmul.f32 %v1461_v40, %v847_v10 }
 0xefb   :  { %v1253_v41 = vadd.f32 -1.0, %v844_v5 }
 0xefd   :  { %851 = vrot.lane.b32.xlu0 %v1253_v41, %s1519_s27 }
 0xf6f   :  { %v852_v8 = vpop.permute.xlu0 %851 }
 0xf70   :  { %v854_v42 = vmul.f32 %v1461_v40, %v852_v8 }
 0xf72   :  { %856 = vrot.lane.b32.xlu1 %v854_v42, %s1520_s4 }
 0xfe4   :  { %v857_v44 = vpop.permute.xlu1 %856 }
 0xfe5   :  { %v859_v45 = vadd.f32 %v857_v44, %v849_v43 }
 0xfe7   :  { %1462 = vtanh.f32 %v859_v45  ;;  %v960_v4 = vrot.slane %v859_v45, 7 }
 0xff4   :  { %v1463_v46 = vpop.eup %1462 }
 0xff5   :  { %862 = vrot.lane.b32.xlu0 %v1463_v46, %s1519_s27 }
0x1067   :  { %v863_v48 = vpop.permute.xlu0 %862 }
0x1068   :  { %v865_v49 = vmul.f32 %v1461_v40, %v863_v48  ;;  %v1094_v40 = vsub.s32 7, %v1586_v6 }
0x106a   :  { %v869_v50 = vrot.slane %v865_v49, %v868_v47  ;;  %v872_v51 = vrot.slane %v865_v49, 5 }
0x106c   :  { %873 = vrot.lane.b32.xlu1 %v872_v51, %s1520_s4  ;;  %v870_v52 = vsel %vm90_vm6, %v869_v50, %v757_v32 }
0x10de   :  { %v874_v53 = vpop.permute.xlu1 %873 }
0x10df   :  { %1398 = vmatmul.mubr.msk.f32.vlgmr.msra.gmra.mxu1 %vm125_vm9, %v874_v53 }
0x10e0   :  { %1419 = vmatprep.mubr.msk.f32.mxu1 %vm1518_vm2, %v1517_v3 }
0x119f   :  { %v943_v54 = vpop.f32.mrf.mxu1 }
0x11a0   :  { %v948_v55 = vrot.slane %v943_v54, 2 }
0x11a1   :  { %v1399_v56 = vpop.f32.mrf.mxu1 }
0x11a2   :  { %v950_v57 = vadd.f32 %v948_v55, %v1714_v31 }
0x11a4   :  { %v1255_v58 = vmul.f32 -1.442695, %v950_v57 }
0x11a6   :  { %1464 = vpow2.f32 %v1255_v58 }
0x11b3   :  { %v1465_v59 = vpop.eup %1464 }
0x11b4   :  { %v954_v60 = vadd.f32 1.0, %v1465_v59 }
0x11b6   :  { %1466 = vrcp.f32 %v954_v60 }
0x11c3   :  { %v1467_v61 = vpop.eup %1466 }
0x11c4   :  { %v957_v62 = vmul.f32 2.0, %v1467_v61  ;;  %v962_v7 = vmul.f32 %v1467_v61, %v960_v4 }
0x11c6   :  { %v1256_v63 = vadd.f32 -1.0, %v957_v62 }
0x11c8   :  { %964 = vrot.lane.b32.xlu0 %v1256_v63, %s1519_s27 }
0x123a   :  { %v965_v0 = vpop.permute.xlu0 %964 }
0x123b   :  { %v967_v2 = vmul.f32 %v1467_v61, %v965_v0 }
0x123d   :  { %969 = vrot.lane.b32.xlu1 %v967_v2, %s1520_s4 }
0x12af   :  { %v970_v9 = vpop.permute.xlu1 %969 }
0x12b0   :  { %v972_v11 = vadd.f32 %v970_v9, %v962_v7 }
0x12b2   :  { %1468 = vtanh.f32 %v972_v11  ;;  %v1073_v33 = vrot.slane %v972_v11, 7 }
0x12bf   :  { %v1469_v12 = vpop.eup %1468 }
0x12c0   :  { %975 = vrot.lane.b32.xlu0 %v1469_v12, %s1519_s27 }
0x1332   :  { %v976_v14 = vpop.permute.xlu0 %975 }
0x1333   :  { %v978_v15 = vmul.f32 %v1467_v61, %v976_v14 }
0x1335   :  { %v982_v16 = vrot.slane %v978_v15, %v981_v13  ;;  %v985_v17 = vrot.slane %v978_v15, 6 }
0x1337   :  { %986 = vrot.lane.b32.xlu1 %v985_v17, %s1520_s4  ;;  %v983_v18 = vsel %vm99_vm7, %v982_v16, %v870_v52 }
0x13a9   :  { %v987_v19 = vpop.permute.xlu1 %986 }
0x13aa   :  { %1409 = vmatmul.mubr.msk.f32.vlgmr.msra.gmra.mxu0 %vm125_vm9, %v987_v19 }
0x146a   :  { %v1056_v20 = vpop.f32.mrf.mxu0 }
0x146b   :  { %v1061_v21 = vrot.slane %v1056_v20, 1 }
0x146c   :  { %v1410_v22 = vpop.f32.mrf.mxu0 }
0x146d   :  { %v1063_v23 = vadd.f32 %v1061_v21, %v1714_v31  ;;  %v1100_v31 = vld [vmem:[%s1868_s5 + $0x18] sm:$0xff] }
0x146e   :  { %1412 = vmatpush3.msra.mxu1 %v1100_v31 }
0x146f   :  { %v1258_v24 = vmul.f32 -1.442695, %v1063_v23  ;;  %1413 = vmatprep.subr.mxu1 %v1517_v3 }
0x1470   :  { %1414 = vmatpush3.msra.mxu1 %v1099_v1 }
0x1471   :  { %1470 = vpow2.f32 %v1258_v24  ;;  %1415 = vmatprep.subr.mxu1 %v1517_v3 }
0x1472   :  { %1416 = vmatpush3.msra.mxu1 %v1098_v37 }
0x1473   :  { %1417 = vmatprep.subr.mxu1 %v1517_v3  ;;  %v1260_v3 = vld [vmem:[%s1869_s6] ss:$0 sm:$0xff]  ;;  %s1203_s6 = sshll.u32 %s1521_s12, 4  ;;  %s1204_s6 = int_to_ptr.vmem [resolvable:$true] %s1203_s6 }
0x1474   :  { %1418 = vmatpush3.msra.mxu1 %v1097_v38  ;;  %s1492_s13 = scalar_lea.vmem %s1204_s6, 128  ;;  %p1497_p6 = scmp.lt.s32.totalorder %s1204_s6, %s1204_s6 }
0x1475   :  { %p1493_p5 = scmp.ne.s32.totalorder %s1204_s6, %s1492_s13  ;;  %p1498_p7 = scmp.lt.s32.totalorder %s1492_s13, %s1492_s13 }
0x1477   :  { %p1499_p8 = por %p1498_p7, %p1497_p6 }
0x1479   :  { %p1500_p9 = pnand %p1499_p8, %p1493_p5 }
0x147e   :  { %v1471_v25 = vpop.eup %1470 }
0x147f   :  { %v1067_v26 = vadd.f32 1.0, %v1471_v25 }
0x1481   :  { %1472 = vrcp.f32 %v1067_v26 }
0x148e   :  { %v1473_v27 = vpop.eup %1472 }
0x148f   :  { %v1070_v28 = vmul.f32 2.0, %v1473_v27  ;;  %v1075_v34 = vmul.f32 %v1473_v27, %v1073_v33 }
0x1491   :  { %v1259_v29 = vadd.f32 -1.0, %v1070_v28 }
0x1493   :  { %1077 = vrot.lane.b32.xlu0 %v1259_v29, %s1519_s27 }
0x1505   :  { %v1078_v30 = vpop.permute.xlu0 %1077 }
0x1506   :  { %v1080_v32 = vmul.f32 %v1473_v27, %v1078_v30 }
0x1508   :  { %1082 = vrot.lane.b32.xlu1 %v1080_v32, %s1520_s4 }
0x157a   :  { %v1083_v35 = vpop.permute.xlu1 %1082 }
0x157b   :  { %v1085_v36 = vadd.f32 %v1083_v35, %v1075_v34 }
0x157d   :  { %1474 = vtanh.f32 %v1085_v36 }
0x158a   :  { %v1475_v39 = vpop.eup %1474 }
0x158b   :  { %1088 = vrot.lane.b32.xlu0 %v1475_v39, %s1519_s27 }
0x15fd   :  { %v1089_v5 = vpop.permute.xlu0 %1088 }
0x15fe   :  { %v1091_v41 = vmul.f32 %v1473_v27, %v1089_v5 }
0x1600   :  { %v1095_v8 = vrot.slane %v1091_v41, %v1094_v40 }
0x1602   :  { %v1096_v42 = vsel %vm108_vm8, %v1095_v8, %v983_v18 }
0x1603   :  { %1109 = vrot.lane.b32.xlu1 %v1096_v42, %s1520_s4 }
0x1675   :  { %v1110_v10 = vpop.permute.xlu1 %1109 }
0x1676   :  { %1420 = vmatmul.mubr.msk.f32.vlgmr.msra.gmra.mxu1 %vm125_vm9, %v1110_v10 }
0x1736   :  { %v1179_v43 = vpop.f32.mrf.mxu1 }
0x1737   :  { %v1180_v44 = vadd.f32 %v1260_v3, %v1179_v43 }
0x1738   :  { %v1421_v45 = vpop.f32.mrf.mxu1 }
0x1739   :  { %v1184_v46 = vsel %vm1183_vm10, %v1180_v44, -inf }
0x173a   :  { %1185 = vmax.xlane.f32.xlu0 %v1184_v46 }
0x17c3   :  { %v1186_v47 = vpop.xlane.xlu0 %1185 }
0x17c4   :  { %v1187_v48 = vsub.f32 %v1180_v44, %v1186_v47 }
0x17c6   :  { %v1188_v6 = vmul.f32 1.442695, %v1187_v48 }
0x17c8   :  { %1476 = vpow2.f32 %v1188_v6 }
0x17d5   :  { %v1477_v49 = vpop.eup %1476 }
0x17d6   :  { %v1190_v50 = vsel %vm1183_vm10, %v1477_v49, 0.0 }
0x17d7   :  { %1191 = vadd.xlane.f32.xlu1 %v1190_v50 }
0x1860   :  { %v1192_v51 = vpop.xlane.xlu1 %1191 }
0x1861   :  { %1478 = vlog2.f32 %v1192_v51 }
0x186e   :  { %v1479_v52 = vpop.eup %1478 }
0x186f   :  { %v1194_v53 = vmul.f32 0.6931472, %v1479_v52 }
0x1871   :  { %v1195_v54 = vsub.f32 %v1187_v48, %v1194_v53 }
0x1873   :  { %1196 = vst.msk [vmem:[#allocation5] sm:$0xff] %vm1183_vm10, %v1195_v54 }
0x1874   :  { %1503 = shalt.err (!%p1500_p9)
}
0x1875   :  { %1206 = dma.vmem_to_hbm [thread:$0]  %s1204_s6, 128, %s1870_s7, [#allocation3]  }
0x1876   :  { %1514 = dma.done.wait [#allocation3], 128  }
0x1877   :  { %1515 = vsyncadd [#allocation3], 4294967168 }
0x1878   :  { %1210 = vsyncpa [#allocation3], 1 }
0x1879   :  { %1211 = vsyncpa [#allocation4], 1 }

</bundles_post_ra>
